<compile_context>
chip_gen: v6e
topology: v6e:2x2x1
jax: 0.10.0
libtpu: 0.0.40
codegen_flags: <defaults>
</compile_context>

<pallas_src>
import functools

import jax
import jax.numpy as jnp
from jax.experimental import pallas as pl
from jax.experimental.pallas import tpu as pltpu

NEG_SLOPE = 0.01  # nn.LeakyReLU default
SUBLANE = 8


def _round_up(n, m):
    return ((n + m - 1) // m) * m


def _leaky_relu(x):
    return jnp.where(x > 0, x, NEG_SLOPE * x)


def dnn_kernel(x_ref, w1_ref, b1_ref, w2_ref, b2_ref, w3_ref, b3_ref, o_ref):
    # fc1 + LeakyReLU  (MXU fed in native operand dtype, f32 accumulation)
    h1 = jnp.dot(x_ref[...], w1_ref[...], preferred_element_type=jnp.float32)
    h1 = _leaky_relu(h1 + b1_ref[...].astype(jnp.float32))

    # fc2 + residual + LeakyReLU  (activation cast to weight dtype for the MXU
    # feed; bias/residual/epilogue stay f32)
    h2 = jnp.dot(h1.astype(w2_ref.dtype), w2_ref[...],
                 preferred_element_type=jnp.float32)
    h2 = _leaky_relu(h2 + b2_ref[...].astype(jnp.float32) + h1)

    # fc3 + residual + LeakyReLU
    y = jnp.dot(h2.astype(w3_ref.dtype), w3_ref[...],
                preferred_element_type=jnp.float32)
    y = _leaky_relu(y + b3_ref[...].astype(jnp.float32) + h2)

    o_ref[...] = y.astype(o_ref.dtype)


def _physical_vmem_bytes():
    try:
        return int(pltpu.get_tpu_info().vmem_capacity_bytes)
    except Exception:
        return 64 * 1024 * 1024  # v7x floor; v5e/v6e have 128 MiB


def _pick_batch_tile(B, block_b):
    tb = min(block_b, _round_up(B, SUBLANE))
    # Ensure >= 2 grid steps for mid/large batches so both v7x TensorCores get
    # work and input/output pipelining actually overlaps DMA with compute.
    if B > 4 * SUBLANE:
        tb = min(tb, _round_up(-(-B // 2), SUBLANE))
    return max(SUBLANE, _round_up(tb, SUBLANE))


@functools.partial(jax.jit, static_argnames=("block_b",))
def dnnnet_forward(x, w1, b1, w2, b2, w3, b3, *, block_b=1024):
    B, F = x.shape
    Fi, H = w1.shape
    H2a, H2b = w2.shape
    H3, O = w3.shape
    assert Fi == F and H2a == H and H2b == H and H3 == H, "inconsistent layer shapes"
    # The module's fc3 residual add requires out_size == hidden_size.
    assert O == H, "DNNnet residual structure requires out_size == hidden_size"

    b1 = b1.reshape(1, H)
    b2 = b2.reshape(1, H)
    b3 = b3.reshape(1, O)

    itemsize = lambda a: jnp.dtype(a.dtype).itemsize
    w_bytes = sum(int(a.size) * itemsize(a) for a in (w1, b1, w2, b2, w3, b3))
    vmem_cap = (3 * _physical_vmem_bytes()) // 4

    # TODO(synk): add a K/N reduction grid axis (pltpu.emit_pipeline over weight
    # chunks) once resident weights alone exceed the VMEM budget (H ~ 2048 f32 on v7x).
    def vmem_need(tb_):
        tiles = 2 * tb_ * (F * itemsize(x) + O * itemsize(x))  # double-buffered in/out tiles
        interm = 3 * tb_ * max(H, O) * 4                       # f32 h1 / h2 / y
        return 2 * w_bytes + tiles + interm

    tb = _pick_batch_tile(B, block_b)
    while vmem_need(tb) > vmem_cap and tb > SUBLANE:
        tb = max(SUBLANE, _round_up(tb // 2, SUBLANE))

    grid = (pl.cdiv(B, tb),)  # ragged final block is masked by Pallas; rows independent
    vmem_limit = int(min(vmem_cap, max(8 * 1024 * 1024, 2 * vmem_need(tb))))

    cost = pl.CostEstimate(
        flops=2 * B * (F * H + H * H + H * O),
        transcendentals=0,
        bytes_accessed=int(B * F * itemsize(x) + B * O * itemsize(x) + w_bytes),
    )

    # Constant-index blocks: weights/biases are DMA'd once and stay VMEM-resident.
    const_spec = lambda arr: pl.BlockSpec(arr.shape, lambda i: (0, 0))

    return pl.pallas_call(
        dnn_kernel,
        out_shape=jax.ShapeDtypeStruct((B, O), x.dtype),
        grid=grid,
        in_specs=[
            pl.BlockSpec((tb, F), lambda i: (i, 0)),  # batch-tiled input
            const_spec(w1), const_spec(b1),
            const_spec(w2), const_spec(b2),
            const_spec(w3), const_spec(b3),
        ],
        out_specs=pl.BlockSpec((tb, O), lambda i: (i, 0)),
        compiler_params=pltpu.CompilerParams(
            dimension_semantics=("parallel",),  # megacore sharding on v7x
            vmem_limit_bytes=vmem_limit,
        ),
        cost_estimate=cost,
    )(x, w1, b1, w2, b2, w3, b3)


def init_params(key, input_size, hidden_size, out_size, dtype=jnp.float32):
    # PyTorch-style uniform(-1/sqrt(fan_in), 1/sqrt(fan_in)) init, deterministic.
    keys = jax.random.split(key, 6)

    def linear(kw, kb, fan_in, fan_out):
        bound = 1.0 / jnp.sqrt(jnp.float32(fan_in))
        w = jax.random.uniform(kw, (fan_in, fan_out), jnp.float32, -bound, bound)
        b = jax.random.uniform(kb, (1, fan_out), jnp.float32, -bound, bound)
        return w.astype(dtype), b.astype(dtype)

    w1, b1 = linear(keys[0], keys[1], input_size, hidden_size)
    w2, b2 = linear(keys[2], keys[3], hidden_size, hidden_size)
    w3, b3 = linear(keys[4], keys[5], hidden_size, out_size)
    return w1, b1, w2, b2, w3, b3


def reference_forward(x, w1, b1, w2, b2, w3, b3):
    # Mirrors the kernel's numerics: MXU feeds in operand dtype, f32 accumulation,
    # f32 bias/residual/LeakyReLU epilogue. For f32 inputs this is exactly the
    # original module's math.
    f32 = jnp.float32
    h1 = _leaky_relu(jnp.dot(x, w1, preferred_element_type=f32) + b1.astype(f32))
    h2 = _leaky_relu(jnp.dot(h1.astype(w2.dtype), w2, preferred_element_type=f32)
                     + b2.astype(f32) + h1)
    return _leaky_relu(jnp.dot(h2.astype(w3.dtype), w3, preferred_element_type=f32)
                       + b3.astype(f32) + h2)


if __name__ == "__main__":
    # out_size must equal hidden_size for the module's residual adds to be valid.
    B, INPUT_SIZE, HIDDEN_SIZE, OUT_SIZE = 8, 16, 32, 32

    key = jax.random.PRNGKey(0)
    kx, kp, kx2 = jax.random.split(key, 3)

    # --- f32, small single-tile case
    x = jax.random.normal(kx, (B, INPUT_SIZE), jnp.float32)
    params = init_params(kp, INPUT_SIZE, HIDDEN_SIZE, OUT_SIZE)
    out = jax.block_until_ready(dnnnet_forward(x, *params))
    ref = reference_forward(x, *params)
    assert out.shape == (B, OUT_SIZE)
    assert jnp.allclose(out, ref, atol=1e-5, rtol=1e-5)

    # --- f32, multi-tile grid with a ragged (masked) final block — no batch pad/slice
    B2 = 300
    x2 = jax.random.normal(kx2, (B2, INPUT_SIZE), jnp.float32)
    out2 = jax.block_until_ready(dnnnet_forward(x2, *params, block_b=128))
    ref2 = reference_forward(x2, *params)
    assert out2.shape == (B2, OUT_SIZE)
    assert jnp.allclose(out2, ref2, atol=1e-5, rtol=1e-5)

    # --- bf16 MXU feed (halved HBM traffic on v6e/v7x), f32 accumulation/epilogue
    xb = x2.astype(jnp.bfloat16)
    params_b = tuple(p.astype(jnp.bfloat16) for p in params)
    out3 = jax.block_until_ready(dnnnet_forward(xb, *params_b, block_b=128))
    ref3 = reference_forward(xb, *params_b)
    assert out3.shape == (B2, OUT_SIZE) and out3.dtype == jnp.bfloat16
    assert jnp.allclose(out3.astype(jnp.float32), ref3, atol=5e-2, rtol=5e-2)

    print("KERNEL_OK")
</pallas_src>

<mosaic_0001>
module attributes {stable_mosaic.version = 11 : i64} {
  func.func @dnn_kernel(%arg0: i32, %arg1: memref<8x16xf32, #tpu.memory_space<vmem>>, %arg2: memref<16x32xf32, #tpu.memory_space<vmem>>, %arg3: memref<1x32xf32, #tpu.memory_space<vmem>>, %arg4: memref<32x32xf32, #tpu.memory_space<vmem>>, %arg5: memref<1x32xf32, #tpu.memory_space<vmem>>, %arg6: memref<32x32xf32, #tpu.memory_space<vmem>>, %arg7: memref<1x32xf32, #tpu.memory_space<vmem>>, %arg8: memref<8x32xf32, #tpu.memory_space<vmem>>) attributes {dimension_semantics = [#tpu.dimension_semantics<parallel>], iteration_bounds = array<i64: 1>, scalar_prefetch = 0 : i64, scratch_operands = 0 : i64, tpu.core_type = #tpu.core_type<tc>, window_params = [{transform_indices = @transform_0, window_bounds = array<i64: 8, 16>}, {pipeline_mode = #tpu.pipeline_mode<synchronous>, transform_indices = @transform_1, window_bounds = array<i64: 16, 32>}, {pipeline_mode = #tpu.pipeline_mode<synchronous>, transform_indices = @transform_2, window_bounds = array<i64: 1, 32>}, {pipeline_mode = #tpu.pipeline_mode<synchronous>, transform_indices = @transform_3, window_bounds = array<i64: 32, 32>}, {pipeline_mode = #tpu.pipeline_mode<synchronous>, transform_indices = @transform_4, window_bounds = array<i64: 1, 32>}, {pipeline_mode = #tpu.pipeline_mode<synchronous>, transform_indices = @transform_5, window_bounds = array<i64: 32, 32>}, {pipeline_mode = #tpu.pipeline_mode<synchronous>, transform_indices = @transform_6, window_bounds = array<i64: 1, 32>}, {transform_indices = @transform_7, window_bounds = array<i64: 8, 32>}]} {
    %c0 = arith.constant 0 : index
    %c0_0 = arith.constant 0 : index
    %0 = vector.load %arg1[%c0, %c0_0] : memref<8x16xf32, #tpu.memory_space<vmem>>, vector<8x16xf32>
    %c0_1 = arith.constant 0 : index
    %c0_2 = arith.constant 0 : index
    %1 = vector.load %arg2[%c0_1, %c0_2] : memref<16x32xf32, #tpu.memory_space<vmem>>, vector<16x32xf32>
    %cst = arith.constant dense<0.000000e+00> : vector<8x32xf32>
    %2 = tpu.matmul %0, %1, %cst {dimension_numbers = #tpu.dot_dimension_numbers<[1], [0], [0], [1], [0, 0, 1, 1], [], []>} : vector<8x16xf32>, vector<16x32xf32>, vector<8x32xf32> -> vector<8x32xf32>
    %c0_3 = arith.constant 0 : index
    %c0_4 = arith.constant 0 : index
    %3 = vector.load %arg3[%c0_3, %c0_4] : memref<1x32xf32, #tpu.memory_space<vmem>>, vector<1x32xf32>
    %4 = vector.broadcast %3 : vector<1x32xf32> to vector<8x32xf32>
    %5 = arith.addf %2, %4 : vector<8x32xf32>
    %cst_5 = arith.constant 0.000000e+00 : f32
    %6 = vector.broadcast %cst_5 : f32 to vector<8x32xf32>
    %7 = arith.cmpf ogt, %5, %6 : vector<8x32xf32>
    %cst_6 = arith.constant 0.00999999977 : f32
    %8 = vector.broadcast %cst_6 : f32 to vector<8x32xf32>
    %9 = arith.mulf %8, %5 : vector<8x32xf32>
    %10 = arith.select %7, %5, %9 : vector<8x32xi1>, vector<8x32xf32>
    %c0_7 = arith.constant 0 : index
    %c0_8 = arith.constant 0 : index
    %11 = vector.load %arg4[%c0_7, %c0_8] : memref<32x32xf32, #tpu.memory_space<vmem>>, vector<32x32xf32>
    %cst_9 = arith.constant dense<0.000000e+00> : vector<8x32xf32>
    %12 = tpu.matmul %10, %11, %cst_9 {dimension_numbers = #tpu.dot_dimension_numbers<[1], [0], [0], [1], [0, 0, 1, 1], [], []>} : vector<8x32xf32>, vector<32x32xf32>, vector<8x32xf32> -> vector<8x32xf32>
    %c0_10 = arith.constant 0 : index
    %c0_11 = arith.constant 0 : index
    %13 = vector.load %arg5[%c0_10, %c0_11] : memref<1x32xf32, #tpu.memory_space<vmem>>, vector<1x32xf32>
    %14 = vector.broadcast %13 : vector<1x32xf32> to vector<8x32xf32>
    %15 = arith.addf %12, %14 : vector<8x32xf32>
    %16 = arith.addf %15, %10 : vector<8x32xf32>
    %cst_12 = arith.constant 0.000000e+00 : f32
    %17 = vector.broadcast %cst_12 : f32 to vector<8x32xf32>
    %18 = arith.cmpf ogt, %16, %17 : vector<8x32xf32>
    %cst_13 = arith.constant 0.00999999977 : f32
    %19 = vector.broadcast %cst_13 : f32 to vector<8x32xf32>
    %20 = arith.mulf %19, %16 : vector<8x32xf32>
    %21 = arith.select %18, %16, %20 : vector<8x32xi1>, vector<8x32xf32>
    %c0_14 = arith.constant 0 : index
    %c0_15 = arith.constant 0 : index
    %22 = vector.load %arg6[%c0_14, %c0_15] : memref<32x32xf32, #tpu.memory_space<vmem>>, vector<32x32xf32>
    %cst_16 = arith.constant dense<0.000000e+00> : vector<8x32xf32>
    %23 = tpu.matmul %21, %22, %cst_16 {dimension_numbers = #tpu.dot_dimension_numbers<[1], [0], [0], [1], [0, 0, 1, 1], [], []>} : vector<8x32xf32>, vector<32x32xf32>, vector<8x32xf32> -> vector<8x32xf32>
    %c0_17 = arith.constant 0 : index
    %c0_18 = arith.constant 0 : index
    %24 = vector.load %arg7[%c0_17, %c0_18] : memref<1x32xf32, #tpu.memory_space<vmem>>, vector<1x32xf32>
    %25 = vector.broadcast %24 : vector<1x32xf32> to vector<8x32xf32>
    %26 = arith.addf %23, %25 : vector<8x32xf32>
    %27 = arith.addf %26, %21 : vector<8x32xf32>
    %cst_19 = arith.constant 0.000000e+00 : f32
    %28 = vector.broadcast %cst_19 : f32 to vector<8x32xf32>
    %29 = arith.cmpf ogt, %27, %28 : vector<8x32xf32>
    %cst_20 = arith.constant 0.00999999977 : f32
    %30 = vector.broadcast %cst_20 : f32 to vector<8x32xf32>
    %31 = arith.mulf %30, %27 : vector<8x32xf32>
    %32 = arith.select %29, %27, %31 : vector<8x32xi1>, vector<8x32xf32>
    %c0_21 = arith.constant 0 : index
    %c0_22 = arith.constant 0 : index
    %33 = vector.load %arg8[%c0_21, %c0_22] : memref<8x32xf32, #tpu.memory_space<vmem>>, vector<8x32xf32>
    tpu.vector_store %arg8[%c0_21, %c0_22], %32 {strides = array<i32>} : memref<8x32xf32, #tpu.memory_space<vmem>>, vector<8x32xf32>,
    return
  }
  func.func @transform_0(%arg0: i32) -> (i32, i32) {
    %c0_i32 = arith.constant 0 : i32
    %c0_i32_0 = arith.constant 0 : i32
    return %arg0, %c0_i32 : i32, i32
  }
  func.func @transform_1(%arg0: i32) -> (i32, i32) {
    %c0_i32 = arith.constant 0 : i32
    %c0_i32_0 = arith.constant 0 : i32
    %c0_i32_1 = arith.constant 0 : i32
    return %c0_i32, %c0_i32_0 : i32, i32
  }
  func.func @transform_2(%arg0: i32) -> (i32, i32) {
    %c0_i32 = arith.constant 0 : i32
    %c0_i32_0 = arith.constant 0 : i32
    %c0_i32_1 = arith.constant 0 : i32
    return %c0_i32, %c0_i32_0 : i32, i32
  }
  func.func @transform_3(%arg0: i32) -> (i32, i32) {
    %c0_i32 = arith.constant 0 : i32
    %c0_i32_0 = arith.constant 0 : i32
    %c0_i32_1 = arith.constant 0 : i32
    return %c0_i32, %c0_i32_0 : i32, i32
  }
  func.func @transform_4(%arg0: i32) -> (i32, i32) {
    %c0_i32 = arith.constant 0 : i32
    %c0_i32_0 = arith.constant 0 : i32
    %c0_i32_1 = arith.constant 0 : i32
    return %c0_i32, %c0_i32_0 : i32, i32
  }
  func.func @transform_5(%arg0: i32) -> (i32, i32) {
    %c0_i32 = arith.constant 0 : i32
    %c0_i32_0 = arith.constant 0 : i32
    %c0_i32_1 = arith.constant 0 : i32
    return %c0_i32, %c0_i32_0 : i32, i32
  }
  func.func @transform_6(%arg0: i32) -> (i32, i32) {
    %c0_i32 = arith.constant 0 : i32
    %c0_i32_0 = arith.constant 0 : i32
    %c0_i32_1 = arith.constant 0 : i32
    return %c0_i32, %c0_i32_0 : i32, i32
  }
  func.func @transform_7(%arg0: i32) -> (i32, i32) {
    %c0_i32 = arith.constant 0 : i32
    %c0_i32_0 = arith.constant 0 : i32
    return %arg0, %c0_i32 : i32, i32
  }
}

</mosaic_0001>

<bundles_post_ra>
// kernel: dnnnet_forward.1
= control target key start
LH: loop header
LB: loop body
LE: loop exit
PB: predicated region body
PF: predicated region fallthrough
CT: control target
= control target key end

     0   :  { %12 = vsyncpa [#allocation3], 0  ;;  %s615_s0 = inlined_call_operand.hbm [shape: f32[8,16], index: 0, kind: input, shape index: {}]   ;;  %s616_s1 = inlined_call_operand.hbm [shape: f32[16,32], index: 1, kind: input, shape index: {}]   ;;  %s617_s2 = inlined_call_operand.vmem [shape: f32[1,32], index: 2, kind: input, shape index: {}]   ;;  %s618_s3 = inlined_call_operand.hbm [shape: f32[32,32], index: 3, kind: input, shape index: {}]   ;;  %s619_s4 = inlined_call_operand.vmem [shape: f32[1,32], index: 4, kind: input, shape index: {}]   ;;  %s620_s5 = inlined_call_operand.hbm [shape: f32[32,32], index: 5, kind: input, shape index: {}]   ;;  %s621_s6 = inlined_call_operand.vmem [shape: f32[1,32], index: 6, kind: input, shape index: {}]   ;;  %s622_s7 = inlined_call_operand.hbm [shape: f32[8,32], index: 7, kind: output, shape index: {}]  }
   0x1   :  { %13 = vsyncpa [#allocation6], 0 }
   0x2   :  { %14 = vsyncpa [#allocation9], 0 }
   0x3   :  { %15 = vsyncpa [#allocation4], 0  ;;  %s527_s24 = smov [#allocation5]  }
   0x4   :  { %s31_s25 = sshll.u32 %s527_s24, 4  ;;  %s32_s25 = int_to_ptr.vmem [resolvable:$true] %s31_s25 }
   0x5   :  { %s427_s26 = scalar_lea.vmem %s32_s25, 256  ;;  %p432_p1 = scmp.lt.s32.totalorder %s32_s25, %s32_s25 }
   0x6   :  { %p428_p0 = scmp.ne.s32.totalorder %s32_s25, %s427_s26  ;;  %p433_p2 = scmp.lt.s32.totalorder %s427_s26, %s427_s26 }
   0x8   :  { %p434_p3 = por %p433_p2, %p432_p1 }
   0xa   :  { %p435_p4 = pnand %p434_p3, %p428_p0 }
   0xc   :  { %438 = shalt.err (!%p435_p4)
}
   0xd   :  { %s528_s27 = smov 128   ;;  %s529_s28 = smov 8  }
   0xe   :  { %37 = dma.hbm_to_vmem [thread:$0]  %s616_s1, 256, %s32_s25, [#allocation6], %s528_s27, %s528_s27, %s529_s28  }
   0xf   :  { %s530_s8 = smov [#allocation2]   ;;  %s531_s10 = smov [#allocation7]  }
  0x10   :  { %s22_s9 = sshll.u32 %s530_s8, 4  ;;  %s45_s11 = sshll.u32 %s531_s10, 4  ;;  %s23_s9 = int_to_ptr.vmem [resolvable:$true] %s22_s9  ;;  %s46_s11 = int_to_ptr.vmem [resolvable:$true] %s45_s11 }
  0x11   :  { %s447_s12 = scalar_lea.vmem %s23_s9, 128  ;;  %p452_p6 = scmp.lt.s32.totalorder %s23_s9, %s23_s9 }
  0x12   :  { %p448_p5 = scmp.ne.s32.totalorder %s23_s9, %s447_s12  ;;  %p453_p7 = scmp.lt.s32.totalorder %s447_s12, %s447_s12 }
  0x14   :  { %p454_p8 = por %p453_p7, %p452_p6 }
  0x16   :  { %p455_p9 = pnand %p454_p8, %p448_p5 }
  0x18   :  { %458 = shalt.err (!%p455_p9)
}
  0x19   :  { %25 = dma.hbm_to_vmem [thread:$0]  %s615_s0, 128, %s23_s9, [#allocation3]  }
  0x1a   :  { %s467_s15 = scalar_lea.vmem %s46_s11, 512  ;;  %p472_p11 = scmp.lt.s32.totalorder %s46_s11, %s46_s11 }
  0x1b   :  { %p468_p10 = scmp.ne.s32.totalorder %s46_s11, %s467_s15  ;;  %p473_p12 = scmp.lt.s32.totalorder %s467_s15, %s467_s15 }
  0x1d   :  { %p474_p13 = por %p473_p12, %p472_p11 }
  0x1f   :  { %p475_p0 = pnand %p474_p13, %p468_p10 }
  0x21   :  { %478 = shalt.err (!%p475_p0)
}
  0x22   :  { %51 = dma.hbm_to_vmem [thread:$0]  %s618_s3, 512, %s46_s11, [#allocation6], %s528_s27, %s528_s27, %s529_s28  }
  0x23   :  { %s532_s17 = smov [#allocation8]  }
  0x24   :  { %s59_s18 = sshll.u32 %s532_s17, 4  ;;  %s60_s18 = int_to_ptr.vmem [resolvable:$true] %s59_s18 }
  0x25   :  { %s487_s19 = scalar_lea.vmem %s60_s18, 512  ;;  %p492_p2 = scmp.lt.s32.totalorder %s60_s18, %s60_s18 }
  0x26   :  { %p488_p1 = scmp.ne.s32.totalorder %s60_s18, %s487_s19  ;;  %p493_p3 = scmp.lt.s32.totalorder %s487_s19, %s487_s19 }
  0x28   :  { %p494_p4 = por %p493_p3, %p492_p2 }
  0x2a   :  { %p495_p5 = pnand %p494_p4, %p488_p1 }
  0x2c   :  { %498 = shalt.err (!%p495_p5)
}
  0x2d   :  { %65 = dma.hbm_to_vmem [thread:$0]  %s620_s5, 512, %s60_s18, [#allocation9], %s528_s27, %s528_s27, %s529_s28  }
  0x2e   :  { %519 = dma.done.wait [#allocation3], 128  }
  0x2f   :  { %520 = vsyncadd [#allocation3], 4294967168 }
  0x30   :  { %521 = dma.done.wait [#allocation6], 768  }
  0x31   :  { %522 = vsyncadd [#allocation6], 4294966528 }
  0x32   :  { %523 = dma.done.wait [#allocation9], 512  }
  0x33   :  { %524 = vsyncadd [#allocation9], 4294966784  ;;  %v533_v0 = vmov 0.0   ;;  %vm534_vm0 = vmmov 0   ;;  %v82_v1 = vld [vmem:[#allocation5 + $0x8] sm:$0xff]  ;;  %v81_v2 = vld [vmem:[#allocation5] sm:$0xff] }
  0x34   :  { %381 = vmatprep.subr.mxu0 %v533_v0  ;;  %385 = vmatprep.mubr.msk.f32.mxu0 %vm534_vm0, %v533_v0  ;;  %v80_v3 = vld [vmem:[#allocation2] sm:$0xff]  ;;  %vm90_vm1 = vcmask 130048   ;;  %v170_v4 = vld [vmem:[#allocation7 + $0x18] sm:$0xff]  ;;  %v169_v5 = vld [vmem:[#allocation7 + $0x10] sm:$0xff]  ;;  %vm178_vm3 = vcmask 261120   ;;  %s535_s24 = smov [#allocation10]  }
  0x35   :  { %388 = vmatprep.subr.mxu1 %v533_v0  ;;  %396 = vmatprep.mubr.msk.f32.mxu1 %vm534_vm0, %v533_v0  ;;  %v168_v6 = vld [vmem:[#allocation7 + $0x8] sm:$0xff]  ;;  %v167_v7 = vld [vmem:[#allocation7] sm:$0xff]  ;;  %v259_v14 = vld [vmem:[#allocation8 + $0x18] sm:$0xff]  ;;  %s351_s25 = sshll.u32 %s535_s24, 4  ;;  %s352_s25 = int_to_ptr.vmem [resolvable:$true] %s351_s25 }
  0x36   :  { %382 = vmatpush3.msra.mxu0 %v82_v1  ;;  %389 = vmatpush3.msra.mxu1 %v170_v4  ;;  %v362_v8 = vld [vmem:[%s617_s2] ss:$0 sm:$0xff]  ;;  %v258_v15 = vld [vmem:[#allocation8 + $0x10] sm:$0xff]  ;;  %v256_v17 = vld [vmem:[#allocation8] sm:$0xff]  ;;  %p504_p7 = scmp.lt.s32.totalorder %s352_s25, %s352_s25 }
  0x37   :  { %383 = vmatprep.subr.mxu0 %v533_v0  ;;  %390 = vmatprep.subr.mxu1 %v533_v0  ;;  %v257_v16 = vld [vmem:[#allocation8 + $0x8] sm:$0xff] }
  0x38   :  { %384 = vmatpush3.msra.mxu0 %v81_v2  ;;  %391 = vmatpush3.msra.mxu1 %v169_v5  ;;  %v364_v18 = vld [vmem:[%s619_s4] ss:$0 sm:$0xff]  ;;  %s499_s4 = scalar_lea.vmem %s352_s25, 128 }
  0x39   :  { %386 = vmatmul.mubr.msk.f32.vlgmr.msra.gmra.mxu0 %vm90_vm1, %v80_v3  ;;  %399 = vmatprep.subr.mxu0 %v533_v0  ;;  %v366_v25 = vld [vmem:[%s621_s6] ss:$0 sm:$0xff]  ;;  %p500_p6 = scmp.ne.s32.totalorder %s352_s25, %s499_s4  ;;  %p505_p8 = scmp.lt.s32.totalorder %s499_s4, %s499_s4 }
  0x3a   :  { %407 = vmatprep.mubr.msk.f32.mxu0 %vm534_vm0, %v533_v0  ;;  %392 = vmatprep.subr.mxu1 %v533_v0 }
  0x3b   :  { %393 = vmatpush3.msra.mxu1 %v168_v6  ;;  %400 = vmatpush3.msra.mxu0 %v259_v14  ;;  %p506_p9 = por %p505_p8, %p504_p7 }
  0x3c   :  { %394 = vmatprep.subr.mxu1 %v533_v0  ;;  %401 = vmatprep.subr.mxu0 %v533_v0 }
  0x3d   :  { %395 = vmatpush3.msra.mxu1 %v167_v7  ;;  %402 = vmatpush3.msra.mxu0 %v258_v15  ;;  %p507_p10 = pnand %p506_p9, %p500_p6 }
  0x3e   :  { %403 = vmatprep.subr.mxu0 %v533_v0 }
  0x3f   :  { %404 = vmatpush3.msra.mxu0 %v257_v16 }
  0x40   :  { %405 = vmatprep.subr.mxu0 %v533_v0 }
  0x41   :  { %406 = vmatpush3.msra.mxu0 %v256_v17 }
  0xf9   :  { %v160_v9 = vpop.f32.mrf.mxu0 }
  0xfa   :  { %v161_v10 = vadd.f32 %v362_v8, %v160_v9 }
  0xfb   :  { %v387_v11 = vpop.f32.mrf.mxu0 }
  0xfc   :  { %vm164_vm2 = vcmp.gt.f32.partialorder %v161_v10, 0.0  ;;  %v165_v12 = vmul.f32 0.01, %v161_v10 }
  0xfe   :  { %v166_v13 = vsel %vm164_vm2, %v161_v10, %v165_v12 }
  0xff   :  { %397 = vmatmul.mubr.msk.f32.vlgmr.msra.gmra.mxu1 %vm178_vm3, %v166_v13 }
 0x1bf   :  { %v248_v19 = vpop.f32.mrf.mxu1 }
 0x1c0   :  { %v249_v20 = vadd.f32 %v364_v18, %v248_v19 }
 0x1c1   :  { %v398_v21 = vpop.f32.mrf.mxu1 }
 0x1c2   :  { %v252_v22 = vadd.f32 %v249_v20, %v166_v13 }
 0x1c4   :  { %vm253_vm4 = vcmp.gt.f32.partialorder %v252_v22, 0.0  ;;  %v254_v23 = vmul.f32 0.01, %v252_v22 }
 0x1c6   :  { %v255_v24 = vsel %vm253_vm4, %v252_v22, %v254_v23 }
 0x1c7   :  { %408 = vmatmul.mubr.msk.f32.vlgmr.msra.gmra.mxu0 %vm178_vm3, %v255_v24 }
 0x287   :  { %v336_v26 = vpop.f32.mrf.mxu0 }
 0x288   :  { %v337_v27 = vadd.f32 %v366_v25, %v336_v26 }
 0x289   :  { %v409_v28 = vpop.f32.mrf.mxu0 }
 0x28a   :  { %v340_v29 = vadd.f32 %v337_v27, %v255_v24 }
 0x28c   :  { %v342_v30 = vmul.f32 0.01, %v340_v29  ;;  %vm341_vm5 = vcmp.gt.f32.partialorder %v340_v29, 0.0 }
 0x28e   :  { %v343_v31 = vsel %vm341_vm5, %v340_v29, %v342_v30 }
 0x28f   :  { %344 = vst.msk [vmem:[#allocation10] sm:$0xff] %vm178_vm3, %v343_v31 }
 0x290   :  { %510 = shalt.err (!%p507_p10)
}
 0x291   :  { %354 = dma.vmem_to_hbm [thread:$0]  %s352_s25, 128, %s622_s7, [#allocation4]  }
 0x292   :  { %525 = dma.done.wait [#allocation4], 128  }
 0x293   :  { %526 = vsyncadd [#allocation4], 4294967168 }
 0x294   :  { %358 = vsyncpa [#allocation3], 1 }
 0x295   :  { %359 = vsyncpa [#allocation6], 1 }
 0x296   :  { %360 = vsyncpa [#allocation9], 1 }
 0x297   :  { %361 = vsyncpa [#allocation4], 1 }

</bundles_post_ra>
